<compile_context>
chip_gen: v7x
topology: tpu7x:2x2x1
jax: 0.10.0
libtpu: 0.0.40
codegen_flags: <defaults>
</compile_context>

<pallas_src>
import math

import jax
import jax.numpy as jnp
from jax.experimental import pallas as pl
from jax.experimental.pallas import tpu as pltpu


# ----------------------------------------------------------------------------
# Kernel: identity copy of one (tile_rows, lanes) tile.
# ----------------------------------------------------------------------------
def _copy_kernel(x_ref, o_ref):
    o_ref[...] = x_ref[...]


# ----------------------------------------------------------------------------
# Helpers
# ----------------------------------------------------------------------------
def _resolve_view_shape(target_shape, total):
    """Resolve a PyTorch-style view shape (incl. a single -1) against `total`."""
    shape = tuple(int(d) for d in target_shape)
    if shape.count(-1) > 1:
        raise ValueError("only one dimension can be inferred (-1)")
    if -1 in shape:
        known = math.prod(d for d in shape if d != -1)
        if known == 0 or total % known != 0:
            raise ValueError(f"cannot infer -1: {total} elements into shape {shape}")
        shape = tuple(total // known if d == -1 else d for d in shape)
    if math.prod(shape) != total:
        raise ValueError(f"view size mismatch: {total} elements into shape {shape}")
    return shape


def _choose_2d_layout(total, last):
    """Pick a lane-dense (rows, lanes) factorization of a contiguous buffer."""
    # Prefer a wide, 128-multiple lane axis independent of the original last dim.
    for lanes in (4096, 2048, 1024, 512, 256, 128):
        if total % lanes == 0:
            return total // lanes, lanes
    # Fallback: keep the original last dim as the lane axis.
    if last > 0 and total % last == 0:
        return total // last, last
    return 1, total


def _pallas_contiguous_copy(x):
    """Materializing identity copy of a contiguous buffer via a tiled Pallas kernel."""
    total = x.size
    last = x.shape[-1] if x.ndim > 0 else 1
    rows, lanes = _choose_2d_layout(total, last)
    x2d = x.reshape(rows, lanes)

    itemsize = jnp.dtype(x.dtype).itemsize
    # Sublane packing: 8 for 4-byte, 16 for 2-byte, 32 for 1-byte dtypes.
    sublane = {1: 32, 2: 16, 4: 8, 8: 8}.get(itemsize, 8)

    # ~4 MiB per tile: 1 in + 1 out, double-buffered => ~16 MiB VMEM, safe on
    # v7x's 32 MiB default scoped limit, and large enough for ~85%+ of HBM
    # roofline on v5e/v6e.
    target_tile_bytes = 4 * 1024 * 1024
    tile_rows = (target_tile_bytes // max(lanes * itemsize, 1)) // sublane * sublane
    tile_rows = max(sublane, tile_rows)
    if tile_rows >= rows:
        tile_rows = rows  # full-extent block (always legal)

    grid = (pl.cdiv(rows, tile_rows),)

    copied = pl.pallas_call(
        _copy_kernel,
        out_shape=jax.ShapeDtypeStruct((rows, lanes), x.dtype),
        grid=grid,
        in_specs=[pl.BlockSpec((tile_rows, lanes), lambda i: (i, 0))],
        out_specs=pl.BlockSpec((tile_rows, lanes), lambda i: (i, 0)),
        compiler_params=pltpu.CompilerParams(
            dimension_semantics=("parallel",),
        ),
    )(x2d)
    return copied


# ----------------------------------------------------------------------------
# Public entry point: torch.ops.aten.view.default(x, target_shape)
# ----------------------------------------------------------------------------
def aten_view(x, target_shape, *, force_pallas_copy=False):
    """Pallas-backed equivalent of torch.ops.aten.view.default(x, target_shape).

    By default this is the metadata-only reshape (exact aten.view semantics on
    contiguous tensors => zero HBM traffic).  Set force_pallas_copy=True to
    materialize the result through the tiled Pallas copy kernel.
    """
    total = int(x.size)
    shape = _resolve_view_shape(target_shape, total)

    # Zero-element tensors: nothing to copy, just reinterpret.
    if total == 0 or not force_pallas_copy:
        return jnp.reshape(x, shape)

    copied = _pallas_contiguous_copy(x)
    # Metadata-only reinterpretation of the copied contiguous buffer.
    return copied.reshape(shape)


if __name__ == "__main__":
    key = jax.random.PRNGKey(0)
    # YOLOS-style view: split hidden into (num_heads, head_dim):
    # [batch, seq, hidden] -> [batch, seq, num_heads, head_dim]
    batch, seq, hidden = 2, 8, 32
    num_heads, head_dim = 4, 8

    x = jax.random.normal(key, (batch, seq, hidden), dtype=jnp.float32)
    target = (batch, seq, num_heads, head_dim)
    ref = x.reshape(target)

    # Fast path (metadata-only, the real aten.view semantics).
    out_fast = aten_view(x, target)
    # Pallas copy path (exercises the tiled kernel on TPU).
    out_copy = aten_view(x, target, force_pallas_copy=True)
    # -1 inference path.
    out_infer = aten_view(x, (batch, seq, -1, head_dim), force_pallas_copy=True)

    jax.block_until_ready((out_fast, out_copy, out_infer))

    for out in (out_fast, out_copy, out_infer):
        assert out.shape == ref.shape
        assert out.dtype == ref.dtype
        assert bool(jnp.all(out == ref))

    print("KERNEL_OK")
</pallas_src>

<mosaic_0001>
module attributes {stable_mosaic.version = 11 : i64} {
  func.func @_copy_kernel(%arg0: i32, %arg1: memref<1x512xf32, #tpu.memory_space<vmem>>, %arg2: memref<1x512xf32, #tpu.memory_space<vmem>>) attributes {dimension_semantics = [#tpu.dimension_semantics<parallel>], iteration_bounds = array<i64: 1>, scalar_prefetch = 0 : i64, scratch_operands = 0 : i64, tpu.core_type = #tpu.core_type<tc>, window_params = [{transform_indices = @transform_0, window_bounds = array<i64: 1, 512>}, {transform_indices = @transform_1, window_bounds = array<i64: 1, 512>}]} {
    %c0 = arith.constant 0 : index
    %c0_0 = arith.constant 0 : index
    %0 = vector.load %arg1[%c0, %c0_0] : memref<1x512xf32, #tpu.memory_space<vmem>>, vector<1x512xf32>
    %c0_1 = arith.constant 0 : index
    %c0_2 = arith.constant 0 : index
    %1 = vector.load %arg2[%c0_1, %c0_2] : memref<1x512xf32, #tpu.memory_space<vmem>>, vector<1x512xf32>
    tpu.vector_store %arg2[%c0_1, %c0_2], %0 {strides = array<i32>} : memref<1x512xf32, #tpu.memory_space<vmem>>, vector<1x512xf32>,
    return
  }
  func.func @transform_0(%arg0: i32) -> (i32, i32) {
    %c0_i32 = arith.constant 0 : i32
    %c0_i32_0 = arith.constant 0 : i32
    return %arg0, %c0_i32 : i32, i32
  }
  func.func @transform_1(%arg0: i32) -> (i32, i32) {
    %c0_i32 = arith.constant 0 : i32
    %c0_i32_0 = arith.constant 0 : i32
    return %arg0, %c0_i32 : i32, i32
  }
}

</mosaic_0001>

<bundles_post_ra>
// kernel: tpu_custom_call.1
= control target key start
LH: loop header
LB: loop body
LE: loop exit
PB: predicated region body
PF: predicated region fallthrough
CT: control target
= control target key end

     0   :  { %6 = vsyncpa [#allocation3], 0  ;;  %s128_s0 = inlined_call_operand.hbm [shape: f32[1,512], index: 0, kind: input, shape index: {}]   ;;  %s129_s1 = inlined_call_operand.hbm [shape: f32[1,512], index: 1, kind: output, shape index: {}]  }
   0x1   :  { %7 = vsyncpa [#allocation4], 0  ;;  %s92_s6 = smov [#allocation2]   ;;  %s44_s10 = scalar_lea.hbm %s128_s0, 64 }
   0x2   :  { %s14_s7 = sshll.u32 %s92_s6, 4  ;;  %p45_p0 = scmp.ne.s32.totalorder %s128_s0, %s44_s10  ;;  %s15_s7 = int_to_ptr.vmem [resolvable:$true] %s14_s7 }
   0x3   :  { %p48_p1 = scmp.lt.u32.totalorder %s44_s10, %s128_s0 }
   0x5   :  { %p50_p2 = pnand %p48_p1, %p45_p0 }
   0x7   :  { %53 = shalt.err (!%p50_p2)
}
   0x8   :  { %s54_s15 = scalar_lea.vmem %s15_s7, 64  ;;  %p59_p4 = scmp.lt.s32.totalorder %s15_s7, %s15_s7 }
   0x9   :  { %p55_p3 = scmp.ne.s32.totalorder %s15_s7, %s54_s15  ;;  %p60_p5 = scmp.lt.s32.totalorder %s54_s15, %s54_s15 }
   0xb   :  { %p61_p6 = por %p60_p5, %p59_p4 }
   0xd   :  { %p62_p7 = pnand %p61_p6, %p55_p3 }
   0xf   :  { %65 = shalt.err (!%p62_p7)
}
  0x10   :  { %17 = dma.hbm_to_vmem [thread:$0]  %s128_s0, 64, %s15_s7, [#allocation3]  }
  0x11   :  { %88 = dma.done.wait [#allocation3], 64  }
  0x12   :  { %89 = vsyncadd [#allocation3], 4294967232  ;;  %v22_v0 = vlaneseq  ;;  %s93_s18 = smov [#allocation5]   ;;  %v21_v1 = vld [vmem:[#allocation2] sm:$0xf] }
  0x13   :  { %s33_s19 = sshll.u32 %s93_s18, 4  ;;  %s34_s19 = int_to_ptr.vmem [resolvable:$true] %s33_s19 }
  0x14   :  { %vm24_vm0 = vcmp.lt.s32.totalorder %v22_v0, 512  ;;  %s66_s20 = scalar_lea.vmem %s34_s19, 64  ;;  %p71_p9 = scmp.lt.s32.totalorder %s34_s19, %s34_s19 }
  0x15   :  { %26 = vst.msk [vmem:[#allocation5] sm:$0xf] %vm24_vm0, %v21_v1  ;;  %p67_p8 = scmp.ne.s32.totalorder %s34_s19, %s66_s20  ;;  %p72_p10 = scmp.lt.s32.totalorder %s66_s20, %s66_s20 }
  0x17   :  { %p73_p11 = por %p72_p10, %p71_p9 }
  0x19   :  { %p74_p12 = pnand %p73_p11, %p67_p8 }
  0x1b   :  { %77 = shalt.err (!%p74_p12)
}
  0x1c   :  { %s78_s0 = scalar_lea.hbm %s129_s1, 64 }
  0x1d   :  { %p79_p13 = scmp.ne.s32.totalorder %s129_s1, %s78_s0  ;;  %p82_p0 = scmp.lt.u32.totalorder %s78_s0, %s129_s1 }
  0x1f   :  { %p84_p1 = pnand %p82_p0, %p79_p13 }
  0x21   :  { %87 = shalt.err (!%p84_p1)
}
  0x22   :  { %36 = dma.vmem_to_hbm [thread:$0]  %s34_s19, 64, %s129_s1, [#allocation4]  }
  0x23   :  { %90 = dma.done.wait [#allocation4], 64  }
  0x24   :  { %91 = vsyncadd [#allocation4], 4294967232 }
  0x25   :  { %40 = vsyncpa [#allocation3], 1 }
  0x26   :  { %41 = vsyncpa [#allocation4], 1 }

</bundles_post_ra>
